<compile_context>
chip_gen: v6e
topology: v6e:2x2x1
jax: 0.10.0
libtpu: 0.0.40
codegen_flags: <defaults>
</compile_context>

<pallas_src>
import jax
import jax.numpy as jnp
from jax.experimental import pallas as pl
from jax.experimental.pallas import tpu as pltpu


def _wrapper_kernel(x_ref, ab_ref, o_ref):
    # "clone" (inplace=False): reading into vregs and writing a fresh output
    # block already guarantees no aliasing with the input.
    x = x_ref[...].astype(jnp.float32)          # no-op if input is already f32
    a = ab_ref[:, 0:1]                          # (BR, 1) broadcast along lanes
    b = ab_ref[:, 1:2]
    # Fused Div255 + Normalize:  (x/255 - mean) / std  ==  x * a + b
    o_ref[...] = (x * a + b).astype(o_ref.dtype)


def _vmem_budget_bytes():
    """Generation-aware per-block budget and scoped-VMEM limit."""
    cap = None
    try:
        info = pltpu.get_tpu_info()
        cap = getattr(info, "vmem_capacity_bytes", None)
    except Exception:
        cap = None
    if cap is None:
        cap = 64 * 1024 * 1024                       # conservative (v7x-sized)
    if cap >= 96 * 1024 * 1024:
        # v5e / v6e: 128 MiB physical VMEM -> big blocks, 64 MiB scoped limit.
        return 16 * 1024 * 1024, 64 * 1024 * 1024
    # v7x: 64 MiB physical -> keep double-buffered footprint <= ~24 MiB.
    return 12 * 1024 * 1024, 32 * 1024 * 1024


def _best_lane_block(lanes: int, bl_max: int) -> int:
    """Largest 128-multiple divisor of `lanes` <= bl_max (dense, no ragged
    tail); fall back to bl_max if no such divisor exists."""
    if lanes <= bl_max:
        return lanes                                 # full dim: always legal
    if lanes % 128 == 0:
        best = 0
        for k in range(bl_max // 128, 0, -1):
            d = k * 128
            if lanes % d == 0:
                best = d
                break
        if best:
            return best
    return bl_max                                    # ragged tail fallback


def _choose_tiles(rows: int, lanes: int, in_itemsize: int, out_itemsize: int,
                  budget: int):
    """Pick (BR, BL) respecting TPU tiling and the per-block VMEM budget."""
    BL_MAX = 4096                                    # lanes per block (mult. of 128)
    sub = {1: 32, 2: 16}.get(in_itemsize, 8)         # sublane alignment per dtype

    bl = _best_lane_block(lanes, BL_MAX)

    # per-block bytes = BR*BL*(in + out itemsize) (aux ab block is negligible).
    br = max(1, budget // (bl * (in_itemsize + out_itemsize)))
    if br >= rows:
        br = rows                                    # full row dim (always legal)
    else:
        br = max(sub, (br // sub) * sub)             # keep sublane alignment

    # Guarantee >= 2 grid blocks so both v7x TensorCores get work.
    if pl.cdiv(rows, br) * pl.cdiv(lanes, bl) < 2:
        if lanes >= 256 and lanes % 128 == 0:        # prefer splitting lanes
            half = ((lanes // 2) // 128) * 128
            if half >= 128:
                bl = half
        elif rows >= 2 * sub:                        # else split rows (keeps sub align)
            half = ((rows // 2) // sub) * sub
            if half >= sub:
                br = half
    return br, bl, sub


def wrapper_forward(x_nchw: jax.Array, mean_c: jax.Array, std_c: jax.Array,
                    out_dtype=jnp.float32) -> jax.Array:
    """Equivalent of Wrapper([Div255(), Normalize(mean, std)], inplace=False)(x)."""
    N, C, H, W = x_nchw.shape
    rows, lanes = N * C, H * W

    # Free view: contiguous NCHW reinterpreted as (N*C, H*W).  JAX arrays are
    # always default-layout, so this never materializes an HBM copy.
    x2d = x_nchw.reshape(rows, lanes)

    # Fold Div255 into the per-channel affine constants, pack as (N*C, 2).
    inv_std = 1.0 / std_c.astype(jnp.float32)
    a_c = inv_std / 255.0
    b_c = -mean_c.astype(jnp.float32) * inv_std
    ab = jnp.stack([jnp.tile(a_c, N), jnp.tile(b_c, N)], axis=1)   # (rows, 2) f32

    out_dtype = jnp.dtype(out_dtype)
    in_itemsize = x_nchw.dtype.itemsize
    out_itemsize = out_dtype.itemsize

    budget, vmem_limit = _vmem_budget_bytes()
    br, bl, _ = _choose_tiles(rows, lanes, in_itemsize, out_itemsize, budget)
    grid = (pl.cdiv(rows, br), pl.cdiv(lanes, bl))   # i outer, j inner:
                                                     # ab block index constant
                                                     # across the inner axis.

    cost = pl.CostEstimate(
        flops=2 * rows * lanes,
        transcendentals=0,
        bytes_accessed=rows * lanes * (in_itemsize + out_itemsize) + rows * 2 * 4,
    )

    out2d = pl.pallas_call(
        _wrapper_kernel,
        out_shape=jax.ShapeDtypeStruct((rows, lanes), out_dtype),
        grid=grid,
        in_specs=[
            pl.BlockSpec((br, bl), lambda i, j: (i, j)),
            pl.BlockSpec((br, 2), lambda i, j: (i, 0)),
        ],
        out_specs=pl.BlockSpec((br, bl), lambda i, j: (i, j)),
        compiler_params=pltpu.CompilerParams(
            dimension_semantics=("parallel", "parallel"),
            vmem_limit_bytes=vmem_limit,
        ),
        cost_estimate=cost,
    )(x2d, ab)

    # Free view back to NCHW; the kernel output is already dense/contiguous.
    return out2d.reshape(N, C, H, W)


def _reference(x_nchw, mean_c, std_c):
    # pure-JAX reference of the same transform chain (NCHW semantics)
    x = x_nchw.astype(jnp.float32) / 255.0
    m = mean_c.reshape(1, -1, 1, 1).astype(jnp.float32)
    s = std_c.reshape(1, -1, 1, 1).astype(jnp.float32)
    return (x - m) / s


if __name__ == "__main__":
    key = jax.random.PRNGKey(0)
    k1, k2 = jax.random.split(key)

    # Deterministic transform parameters (Normalize mean/std per channel)
    mean = jnp.array([0.485, 0.456, 0.406, 0.5], dtype=jnp.float32)
    std = jnp.array([0.229, 0.224, 0.225, 0.25], dtype=jnp.float32)

    # Case 1: realistic uint8 image batch (Div255 input); N*C=32 rows, H*W=256 lanes
    x_u8 = jax.random.uniform(k1, (8, 4, 16, 16), jnp.float32, 0.0, 256.0).astype(jnp.uint8)
    out_u8 = jax.block_until_ready(wrapper_forward(x_u8, mean, std))
    ref_u8 = _reference(x_u8, mean, std)
    assert out_u8.shape == x_u8.shape and out_u8.dtype == jnp.float32
    assert jnp.allclose(out_u8, ref_u8, atol=1e-5, rtol=1e-5)

    # Case 2: pre-cast float32 input (Wrapper also accepts float tensors)
    x_f32 = jax.random.uniform(k2, (2, 4, 16, 16), jnp.float32, 0.0, 255.0)
    out_f32 = jax.block_until_ready(wrapper_forward(x_f32, mean, std))
    ref_f32 = _reference(x_f32, mean, std)
    assert out_f32.shape == x_f32.shape and out_f32.dtype == jnp.float32
    assert jnp.allclose(out_f32, ref_f32, atol=1e-5, rtol=1e-5)

    # Case 3: optional bf16 output path (API option only; default stays f32)
    out_bf16 = jax.block_until_ready(wrapper_forward(x_u8, mean, std, out_dtype=jnp.bfloat16))
    assert out_bf16.dtype == jnp.bfloat16
    assert jnp.allclose(out_bf16.astype(jnp.float32), ref_u8, atol=2e-2, rtol=2e-2)

    # TODO(synk): the Wrapper's inplace / storage-aliasing and .contiguous()
    # behavior has no observable equivalent in functional JAX; only the math
    # of the fused transform chain is reproduced.
    print("KERNEL_OK")
</pallas_src>

<mosaic_0001>
module attributes {stable_mosaic.version = 11 : i64} {
  func.func @_wrapper_kernel(%arg0: i32, %arg1: i32, %arg2: memref<32x128xi8, #tpu.memory_space<vmem>>, %arg3: memref<32x2xf32, #tpu.memory_space<vmem>>, %arg4: memref<32x128xf32, #tpu.memory_space<vmem>>) attributes {dimension_semantics = [#tpu.dimension_semantics<parallel>, #tpu.dimension_semantics<parallel>], iteration_bounds = array<i64: 1, 2>, scalar_prefetch = 0 : i64, scratch_operands = 0 : i64, tpu.core_type = #tpu.core_type<tc>, window_params = [{transform_indices = @transform_0, window_bounds = array<i64: 32, 128>}, {transform_indices = @transform_1, window_bounds = array<i64: 32, 2>}, {transform_indices = @transform_2, window_bounds = array<i64: 32, 128>}]} {
    %c0 = arith.constant 0 : index
    %c0_0 = arith.constant 0 : index
    %0 = vector.load %arg2[%c0, %c0_0] : memref<32x128xi8, #tpu.memory_space<vmem>>, vector<32x128xi8>
    %1 = arith.uitofp %0 : vector<32x128xi8> to vector<32x128xf32>
    %c0_1 = arith.constant 0 : index
    %c0_2 = arith.constant 0 : index
    %2 = vector.load %arg3[%c0_1, %c0_2] : memref<32x2xf32, #tpu.memory_space<vmem>>, vector<32x1xf32>
    %c0_3 = arith.constant 0 : index
    %c1 = arith.constant 1 : index
    %3 = vector.load %arg3[%c0_3, %c1] : memref<32x2xf32, #tpu.memory_space<vmem>>, vector<32x1xf32>
    %4 = vector.broadcast %2 : vector<32x1xf32> to vector<32x128xf32>
    %5 = arith.mulf %1, %4 : vector<32x128xf32>
    %6 = vector.broadcast %3 : vector<32x1xf32> to vector<32x128xf32>
    %7 = arith.addf %5, %6 : vector<32x128xf32>
    %c0_4 = arith.constant 0 : index
    %c0_5 = arith.constant 0 : index
    %8 = vector.load %arg4[%c0_4, %c0_5] : memref<32x128xf32, #tpu.memory_space<vmem>>, vector<32x128xf32>
    tpu.vector_store %arg4[%c0_4, %c0_5], %7 {strides = array<i32>} : memref<32x128xf32, #tpu.memory_space<vmem>>, vector<32x128xf32>,
    return
  }
  func.func @transform_0(%arg0: i32, %arg1: i32) -> (i32, i32) {
    %c0_i32 = arith.constant 0 : i32
    return %arg0, %arg1 : i32, i32
  }
  func.func @transform_1(%arg0: i32, %arg1: i32) -> (i32, i32) {
    %c0_i32 = arith.constant 0 : i32
    %c0_i32_0 = arith.constant 0 : i32
    return %arg0, %c0_i32 : i32, i32
  }
  func.func @transform_2(%arg0: i32, %arg1: i32) -> (i32, i32) {
    %c0_i32 = arith.constant 0 : i32
    return %arg0, %arg1 : i32, i32
  }
}

</mosaic_0001>

<bundles_post_ra>
// kernel: tpu_custom_call.1
= control target key start
LH: loop header
LB: loop body
LE: loop exit
PB: predicated region body
PF: predicated region fallthrough
CT: control target
= control target key end

     0   :  { %7 = vsyncpa [#allocation3], 0  ;;  %s669_s0 = inlined_call_operand.vmem [shape: u8[32,256], index: 0, kind: input, shape index: {}]   ;;  %s670_s1 = inlined_call_operand.vmem [shape: f32[32,2], index: 1, kind: input, shape index: {}]   ;;  %s671_s2 = inlined_call_operand.hbm [shape: f32[32,256], index: 2, kind: output, shape index: {}]  }
   0x1   :  { %9 = vsyncpa [#allocation3 + $0x1], 0  ;;  %s539_s9 = smov 0   ;;  %s541_s10 = smov 0  }
   0x2   :  { %s543_s11 = smov 0   ;;  %s545_s12 = smov 0  }
   0x3   :  { %s547_s13 = smov 0   ;;  %s549_s14 = smov 0  }
   0x4 LB: > { %s364_s15 = sadd.s32 4294967295, %s516_s14   ;;  %s365_s16 = sadd.s32 4294967294, %s516_s14   ;;  %s516_s14 = sphi %s549_s14, %s15_s14   ;;  %s512_s13 = sphi %s547_s13, %s678_s13   ;;  %s508_s12 = sphi %s545_s12, %s677_s12   ;;  %s504_s11 = sphi %s543_s11, %s676_s11   ;;  %s500_s10 = sphi %s541_s10, %s675_s10   ;;  %s496_s9 = sphi %s539_s9, %s674_s9  }
   0x5   : > { %s24_s17 = sadd.s32 1, %s512_s13  ;;  %s90_s18 = sadd.s32 1, %s504_s11 }
   0x6   : > { %p25_p0 = scmp.ge.s32.totalorder %s24_s17, 2  ;;  %p100_p1 = scmp.ne.s32.totalorder %s504_s11, %s500_s10 }
   0x7   : > { %p101_p2 = scmp.eq.s32.totalorder %s364_s15, 1  ;;  %p106_p3 = scmp.ne.s32.totalorder %s500_s10, %s496_s9 }
   0x8   : > { %s680_s17 = smov (%p25_p0, %s24_s17), 0  ;;  %p107_p5 = scmp.eq.s32.totalorder %s365_s16, 1 }
   0x9   : > { %p579_p4 = por %p101_p2, %p100_p1  ;;  %s86_s20 = ssub.s32 %s512_s13, %s680_s17 }
   0xa   : > { %p369_p6 = scmp.ge.s32.totalorder %s516_s14, 1  ;;  %p88_p7 = scmp.eq.s32.totalorder %s86_s20, 0 }
   0xb   : > { %p586_p8 = por %p107_p5, %p106_p3  ;;  %p145_p9 = scmp.lt.s32.totalorder %s516_s14, 3 }
   0xc   : > { %s592_s22 = scalar_select %p88_p7, %s504_s11, %s90_s18  }
   0xd   : > { %p146_p10 = pnand %p369_p6, %p145_p9 }
   0xe   : > { %p177_p11 = scmp.lt.s32.totalorder (!%p146_p10), %s508_s12, 1  ;;  %s172_s8 = sand.u32 (!%p146_p10), 1, %s500_s10  }
   0xf   : > { %149 = sbr.rel (%p146_p10) target bundleno = 176 (0xb0), region = 28  ;;  %s370_s15 = sshll.u32 (!%p146_p10), %s172_s8, 5 }
  0x10   : > { %s174_s16 = scalar_lea.vmem (!%p146_p10), [#allocation2], %s370_s15  ;;  %s373_s20 = sshll.u32 (!%p146_p10), %s508_s12, 7 }
  0x11   : > { %s271_s18 = sshll.u32 (!%p146_p10), %s174_s16, 4  ;;  %s620_s25 = scalar_lea.hbm (!%p146_p10), %s671_s2, %s373_s20  ;;  %s615_s18 = int_to_ptr.vmem [resolvable:$true] %s271_s18 }
  0x12   : > { %s440_s26 = scalar_lea.vmem (!%p146_p10), %s615_s18, 512  ;;  %s520_s27 = smov (!%p146_p10), [#allocation2]  }
  0x13   : > { %p441_p12 = scmp.ne.s32.totalorder (!%p146_p10), %s615_s18, %s440_s26  ;;  %s444_s28 = sshll.u32 (!%p146_p10), %s520_s27, 4  ;;  %s445_s28 = int_to_ptr.vmem [resolvable:$false] %s444_s28 }
  0x14   : > { %v205_v0 = vld [vmem:[%s670_s1 + $0x10] sm:$0xff]  ;;  %v203_v1 = vld [vmem:[%s670_s1] sm:$0xff]  ;;  %v518_v2 = vmov 0   ;;  %v206_v3 = vld [vmem:[%s670_s1 + $0x18] sm:$0xff]  ;;  %v519_v5 = vmov 1   ;;  %s178_s3 = scalar_select %p177_p11, %s508_s12, 1 }
  0x15   : > { %437 = vset.pattern.permute.xlu1 %v518_v2  ;;  %436 = vset.pattern.permute.xlu0 %v518_v2  ;;  %v204_v4 = vld [vmem:[%s670_s1 + $0x8] sm:$0xff]  ;;  %s624_s12 = scalar_lea.sflag [#allocation3], %s172_s8  ;;  %p442_p13 = pnand %p441_p12, %p579_p4 }
  0x16   : > { %219 = vperm.xlu1 %437, %v205_v0   ;;  %209 = vperm.xlu0 %436, %v203_v1   ;;  %s371_s4 = sshll.u32 %s178_s3, 3  ;;  %s446_s29 = scalar_lea.vmem %s445_s28, 1024 }
  0x17   : > { %s182_s7 = scalar_lea.vmem %s669_s0, %s371_s4  ;;  %p443_p0 = pneg %p442_p13 }
  0x18   : > { %v190_v6 = vld [vmem:[%s182_s7] sm:$0xff]  ;;  %p447_p1 = scmp.lt.s32.totalorder %s615_s18, %s445_s28  ;;  %p448_p2 = scmp.lt.s32.totalorder %s446_s29, %s440_s26 }
  0x19   : > { %v191_v7 = vunpack.c.0.s8 %v190_v6  ;;  %v192_v8 = vunpack.c.1.s8 %v190_v6  ;;  %v193_v10 = vunpack.c.2.s8 %v190_v6  ;;  %v194_v13 = vunpack.c.3.s8 %v190_v6 }
  0x1a   : > { %224 = vperm.xlu1 %437, %v206_v3   ;;  %214 = vperm.xlu0 %436, %v204_v4   ;;  %p449_p3 = por %p448_p2, %p447_p1 }
  0x1b   : > { %v195_v12 = vand.u32 255, %v191_v7  ;;  %v196_v14 = vand.u32 255, %v192_v8  ;;  %v197_v15 = vand.u32 255, %v193_v10  ;;  %v198_v18 = vand.u32 255, %v194_v13 }
  0x1c   : > { %p450_p5 = pnand %p449_p3, %p443_p0 }
  0x1d   : > { %v199_v16 = vcvt.s32.f32 %v195_v12  ;;  %v200_v20 = vcvt.s32.f32 %v196_v14  ;;  %v201_v21 = vcvt.s32.f32 %v197_v15  ;;  %v202_v23 = vcvt.s32.f32 %v198_v18 }
  0x1e   : > { %439 = vset.pattern.permute.xlu1 %v519_v5  ;;  %438 = vset.pattern.permute.xlu0 %v519_v5 }
  0x1f   : > { %236 = vperm.xlu1 %439, %v204_v4   ;;  %232 = vperm.xlu0 %438, %v203_v1  }
  0x23   : > { %240 = vperm.xlu1 %439, %v205_v0   ;;  %244 = vperm.xlu0 %438, %v206_v3  }
  0x91   : > { %v220_v9 = vpop.permute.xlu1 %219  ;;  %v210_v11 = vpop.permute.xlu0 %209 }
  0x92   : > { %v227_v22 = vmul.f32 %v210_v11, %v199_v16  ;;  %v229_v29 = vmul.f32 %v220_v9, %v201_v21 }
  0x95   : > { %v225_v17 = vpop.permute.xlu1 %224  ;;  %v215_v19 = vpop.permute.xlu0 %214 }
  0x96   : > { %v228_v24 = vmul.f32 %v215_v19, %v200_v20  ;;  %v230_v30 = vmul.f32 %v225_v17, %v202_v23 }
  0x9a   : > { %v237_v25 = vpop.permute.xlu1 %236  ;;  %v233_v26 = vpop.permute.xlu0 %232 }
  0x9b   : > { %v248_v27 = vadd.f32 %v237_v25, %v228_v24  ;;  %v247_v28 = vadd.f32 %v233_v26, %v227_v22 }
  0x9d   : > { %252 = vst [vmem:[%s174_s16 + $0x8] sm:$0xff] %v248_v27  ;;  %251 = vst [vmem:[%s174_s16] sm:$0xff] %v247_v28 }
  0x9e   : > { %v241_v31 = vpop.permute.xlu1 %240  ;;  %v245_v32 = vpop.permute.xlu0 %244 }
  0x9f   : > { %v249_v33 = vadd.f32 %v241_v31, %v229_v29  ;;  %v250_v34 = vadd.f32 %v245_v32, %v230_v30 }
  0xa1   : > { %253 = vst [vmem:[%s174_s16 + $0x10] sm:$0xff] %v249_v33  ;;  %254 = vst [vmem:[%s174_s16 + $0x18] sm:$0xff] %v250_v34 }
  0xa2   : > { %453 = shalt.err (!%p450_p5)
}
  0xa3   : > { %s454_s30 = scalar_lea.hbm %s620_s25, 512  ;;  %s458_s5 = scalar_lea.hbm %s671_s2, 1024 }
  0xa4   : > { %p455_p6 = scmp.ne.s32.totalorder %s620_s25, %s454_s30  ;;  %p459_p10 = scmp.lt.s32.totalorder %s620_s25, %s671_s2 }
  0xa5   : > { %p460_p11 = scmp.lt.s32.totalorder %s458_s5, %s454_s30 }
  0xa6   : > { %p456_p7 = pnand %p455_p6, %p579_p4 }
  0xa7   : > { %p461_p12 = por %p460_p11, %p459_p10 }
  0xa8   : > { %p457_p9 = pneg %p456_p7 }
  0xaa   : > { %p462_p13 = pnand %p461_p12, %p457_p9 }
  0xac   : > { %465 = shalt.err (!%p462_p13)
}
  0xad   : > { %s521_s8 = smov 128   ;;  %s522_s15 = smov 256  }
  0xae   : > { %s523_s16 = smov 8  }
  0xaf   : > { %376 = dma.vmem_to_hbm [thread:$0]  (%p579_p4), %s615_s18, 512, %s620_s25, %s624_s12, %s521_s8, %s522_s15, %s523_s16  }
  0xb0 PF: > { %p382_p0 = scmp.ge.s32.totalorder %s516_s14, 2  ;;  %s286_s20 = sand.u32 1, %s496_s9  }
  0xb1   : > { %s287_s23 = scalar_lea.sflag [#allocation3], %s286_s20 }
  0xb2   : > { %p379_p1 = pnand %p382_p0, %p586_p8 }
  0xb4   : > { %p380_p2 = pneg %p379_p1 }
  0xb6   : > { %491 = dma.done.wait (%p380_p2), %s287_s23, 512  }
  0xb7   : > { %493 = vsyncadd (%p380_p2), %s287_s23, 4294966784  ;;  %s15_s14 = sadd.s32 1, %s516_s14   ;;  %s674_s9 = smov %s500_s10 }
  0xb8   : > { %p12_p3 = scmp.ge.s32.totalorder %s15_s14, 4   ;;  %s675_s10 = smov %s504_s11 }
  0xb9   : > { %s676_s11 = smov %s592_s22  ;;  %s677_s12 = smov %s512_s13 }
  0xba   : > { %s678_s13 = smov %s680_s17  ;;  %14 = sbr.rel (!%p12_p3) target bundleno = 4 (0x4), region = 66 }
  0xbf   :  { %292 = vsyncpa [#allocation3], 1 }
  0xc0   :  { %294 = vsyncpa [#allocation3 + $0x1], 1 }

</bundles_post_ra>
